<compile_context>
chip_gen: v6e
topology: v6e:2x2x1
jax: 0.10.0
libtpu: 0.0.40
codegen_flags: <defaults>
</compile_context>

<pallas_src>
import jax
import jax.numpy as jnp
from jax.experimental import pallas as pl
from jax.experimental.pallas import tpu as pltpu

CLASSES_NUM = 9
LEAKY_SLOPE = 0.01   # F.leaky_relu default negative_slope
OUT_PAD = 128        # lane-dense padded class dimension (sliced off in wrapper)


def _head_kernel(h8_ref, h9_ref, h10_ref, h11_ref,
                 w1_ref, b1_ref, w2_ref, b2_ref,
                 out_ref, acc_ref):
    s = pl.program_id(1)

    @pl.when(s == 0)
    def _init():
        acc_ref[...] = jnp.full(acc_ref.shape, -jnp.inf, acc_ref.dtype)

    # Running max over the streamed sequence tiles.  The reduce runs in the
    # input dtype (max is exact in bf16); only the small [b_tile, H] results
    # are cast to f32, then concatenated into one lane-dense [b_tile, 4H]
    # update of the accumulator.
    tile_max = jnp.concatenate(
        [jnp.max(h_ref[...], axis=1).astype(jnp.float32)
         for h_ref in (h8_ref, h9_ref, h10_ref, h11_ref)],
        axis=-1)
    acc_ref[...] = jnp.maximum(acc_ref[...], tile_max)

    @pl.when(s == pl.num_programs(1) - 1)
    def _finalize():
        pooled = acc_ref[...]                                 # [b_tile, 4H] f32

        # linear1 as a single MXU matmul; the tiny activation is cast to the
        # weight dtype so bf16 weights run natively (f32 accumulation).
        out1 = jnp.dot(pooled.astype(w1_ref.dtype), w1_ref[...],
                       preferred_element_type=jnp.float32)
        out1 = out1 + b1_ref[...].astype(jnp.float32)

        # leaky_relu
        act = jnp.where(out1 >= 0, out1, LEAKY_SLOPE * out1)

        # linear2 against 128-lane-padded weights -> unmasked lane-dense store.
        out2 = jnp.dot(act.astype(w2_ref.dtype), w2_ref[...],
                       preferred_element_type=jnp.float32)
        out2 = out2 + b2_ref[...].astype(jnp.float32)
        out_ref[...] = out2.astype(out_ref.dtype)


def _vmem_capacity_bytes(default=64 << 20):
    """Per-core VMEM capacity; conservative (v7x) default if unavailable."""
    try:
        info = pltpu.get_tpu_info()
        cap = getattr(info, "vmem_capacity_bytes", None)
        if cap:
            return int(cap)
    except Exception:
        pass
    return default


def _sublane_multiple(dtype):
    """Min sublane tile for the second-to-last block dim: 8 (f32), 16 (bf16)."""
    return max(8, 32 // jnp.dtype(dtype).itemsize)


def _pick_batch_tile(B, target=8):
    """Divisor of B, multiple of 8 (or full B) for the [b_tile, 128] output
    block; prefer >= 2 batch tiles so v7x's two TensorCores both get work."""
    cands = [t for t in range(1, B + 1) if B % t == 0 and (t % 8 == 0 or t == B)]
    multi = [t for t in cands if t <= target and B // t >= 2]
    if multi:
        return max(multi)
    small = [t for t in cands if t <= target]
    if small:
        return max(small)
    return min(cands)


def _pick_seq_tile(S, sub_mult, max_rows, cap=None):
    """Largest divisor of S that is a multiple of sub_mult (or S itself),
    fits the per-buffer row budget, and respects an optional cap."""
    cands = {S}
    for t in range(sub_mult, S, sub_mult):
        if S % t == 0:
            cands.add(t)
    cands = sorted(cands)
    if cap is not None:
        capped = [t for t in cands if t <= cap]
        cands = capped if capped else [min(cands)]
    fitting = [t for t in cands if t <= max_rows]
    return max(fitting) if fitting else min(cands)


def domain_classification_head(h8, h9, h10, h11, w1, b1, w2, b2,
                               *, b_tile_target=8, s_tile_cap=None,
                               vmem_headroom_bytes=16 << 20):
    """hN: [B, S, H] (f32 or bf16); w1: [4H, 256]; b1: [1, 256];
    w2: [256, CLASSES_NUM]; b2: [1, CLASSES_NUM].
    Returns [B, CLASSES_NUM] float32."""
    B, S, H = h8.shape
    n1 = w1.shape[1]
    n_cls = w2.shape[1]
    assert w1.shape[0] == 4 * H

    # Pad classifier weights/bias to a lane-dense 128-wide output.
    w2p = jnp.zeros((n1, OUT_PAD), w2.dtype).at[:, :n_cls].set(w2)
    b2p = jnp.zeros((1, OUT_PAD), b2.dtype).at[:, :n_cls].set(b2)

    b_tile = _pick_batch_tile(B, b_tile_target)

    act_itemsize = jnp.dtype(h8.dtype).itemsize
    sub_mult = _sublane_multiple(h8.dtype)

    # --- VMEM-budgeted sequence tiling (generation-aware) --------------------
    vmem_cap = _vmem_capacity_bytes()
    budget = max(vmem_cap - vmem_headroom_bytes, 24 << 20)
    weight_bytes = sum(int(a.size) * jnp.dtype(a.dtype).itemsize
                       for a in (w1, b1, w2p, b2p))
    # Weights are double-buffered by the default pipeline (block index never
    # changes, but the buffers are still allocated); acc scratch + out blocks
    # are the remaining fixed costs.
    fixed_bytes = (2 * weight_bytes
                   + b_tile * 4 * H * 4           # f32 accumulator scratch
                   + 2 * b_tile * OUT_PAD * 4)    # double-buffered output
    per_row_bytes = 4 * 2 * b_tile * H * act_itemsize   # 4 streams x 2 buffers
    max_rows = max((budget - fixed_bytes) // per_row_bytes, 1)
    s_tile = _pick_seq_tile(S, sub_mult, max_rows, cap=s_tile_cap)

    est_bytes = fixed_bytes + per_row_bytes * s_tile
    vmem_limit = int(min(vmem_cap, max(est_bytes + (8 << 20), 32 << 20)))

    grid = (B // b_tile, S // s_tile)

    h_spec = pl.BlockSpec((b_tile, s_tile, H), lambda b, s: (b, s, 0))

    def _full(shape):
        nd = len(shape)
        return pl.BlockSpec(tuple(shape), lambda b, s, _nd=nd: (0,) * _nd)

    hidden_bytes = 4 * B * S * H * act_itemsize
    cost = pl.CostEstimate(
        flops=2 * B * (4 * H) * n1 + 2 * B * n1 * OUT_PAD,
        transcendentals=0,
        bytes_accessed=hidden_bytes + weight_bytes + B * OUT_PAD * 4,
    )

    out_padded = pl.pallas_call(
        _head_kernel,
        out_shape=jax.ShapeDtypeStruct((B, OUT_PAD), jnp.float32),
        grid_spec=pltpu.PrefetchScalarGridSpec(
            num_scalar_prefetch=0,
            grid=grid,
            in_specs=[h_spec, h_spec, h_spec, h_spec,
                      _full(w1.shape), _full(b1.shape),
                      _full(w2p.shape), _full(b2p.shape)],
            out_specs=pl.BlockSpec((b_tile, OUT_PAD), lambda b, s: (b, 0)),
            scratch_shapes=[pltpu.VMEM((b_tile, 4 * H), jnp.float32)],
        ),
        compiler_params=pltpu.CompilerParams(
            dimension_semantics=("parallel", "arbitrary"),
            vmem_limit_bytes=vmem_limit,
        ),
        cost_estimate=cost,
    )(h8, h9, h10, h11, w1, b1, w2p, b2p)

    return out_padded[:, :n_cls]


def reference(h8, h9, h10, h11, w1, b1, w2, b2):
    pooled = jnp.concatenate(
        [jnp.max(h, axis=1).astype(jnp.float32) for h in (h8, h9, h10, h11)],
        axis=-1)
    out1 = pooled @ w1.astype(jnp.float32) + b1.astype(jnp.float32)
    act = jnp.where(out1 >= 0, out1, LEAKY_SLOPE * out1)
    return act @ w2.astype(jnp.float32) + b2.astype(jnp.float32)


if __name__ == "__main__":
    # Small shapes consistent with the module (hidden=32 proxy for 768).  Two
    # cases exercise the streaming grid and both activation dtypes:
    #   f32 : B=16, S=24, s_tile capped to 8  -> grid (2, 3)
    #   bf16: B=16, S=32, s_tile capped to 16 -> grid (2, 2) (sublane-16 rule)
    key = jax.random.PRNGKey(0)
    kk = jax.random.split(key, 8)

    H = 32
    n1 = 256

    # nn.Linear(4H, 256) / nn.Linear(256, CLASSES_NUM) parameters.
    w1 = jax.random.normal(kk[4], (4 * H, n1), dtype=jnp.float32) * 0.02
    b1 = jax.random.normal(kk[5], (1, n1), dtype=jnp.float32) * 0.02
    w2 = jax.random.normal(kk[6], (n1, CLASSES_NUM), dtype=jnp.float32) * 0.02
    b2 = jax.random.normal(kk[7], (1, CLASSES_NUM), dtype=jnp.float32) * 0.02

    for dtype, B, S, s_cap in ((jnp.float32, 16, 24, 8),
                               (jnp.bfloat16, 16, 32, 16)):
        hs = [jax.random.normal(kk[i], (B, S, H), dtype=jnp.float32).astype(dtype)
              for i in range(4)]
        out = domain_classification_head(*hs, w1, b1, w2, b2,
                                         b_tile_target=8, s_tile_cap=s_cap)
        out = jax.block_until_ready(out)
        ref = reference(*hs, w1, b1, w2, b2)
        assert out.shape == (B, CLASSES_NUM)
        assert jnp.allclose(out, ref, atol=1e-4, rtol=1e-4), \
            f"mismatch vs reference ({dtype})"

    print("KERNEL_OK")
</pallas_src>

<mosaic_0001>
module attributes {stable_mosaic.version = 11 : i64} {
  func.func @_head_kernel(%arg0: i32, %arg1: i32, %arg2: memref<8x8x32xf32, #tpu.memory_space<vmem>>, %arg3: memref<8x8x32xf32, #tpu.memory_space<vmem>>, %arg4: memref<8x8x32xf32, #tpu.memory_space<vmem>>, %arg5: memref<8x8x32xf32, #tpu.memory_space<vmem>>, %arg6: memref<128x256xf32, #tpu.memory_space<vmem>>, %arg7: memref<1x256xf32, #tpu.memory_space<vmem>>, %arg8: memref<256x128xf32, #tpu.memory_space<vmem>>, %arg9: memref<1x128xf32, #tpu.memory_space<vmem>>, %arg10: memref<8x128xf32, #tpu.memory_space<vmem>>, %arg11: memref<8x128xf32, #tpu.memory_space<vmem>>) attributes {dimension_semantics = [#tpu.dimension_semantics<parallel>, #tpu.dimension_semantics<arbitrary>], iteration_bounds = array<i64: 2, 3>, scalar_prefetch = 0 : i64, scratch_operands = 1 : i64, tpu.core_type = #tpu.core_type<tc>, window_params = [{transform_indices = @transform_0, window_bounds = array<i64: 8, 8, 32>}, {transform_indices = @transform_1, window_bounds = array<i64: 8, 8, 32>}, {transform_indices = @transform_2, window_bounds = array<i64: 8, 8, 32>}, {transform_indices = @transform_3, window_bounds = array<i64: 8, 8, 32>}, {pipeline_mode = #tpu.pipeline_mode<synchronous>, transform_indices = @transform_4, window_bounds = array<i64: 128, 256>}, {pipeline_mode = #tpu.pipeline_mode<synchronous>, transform_indices = @transform_5, window_bounds = array<i64: 1, 256>}, {pipeline_mode = #tpu.pipeline_mode<synchronous>, transform_indices = @transform_6, window_bounds = array<i64: 256, 128>}, {pipeline_mode = #tpu.pipeline_mode<synchronous>, transform_indices = @transform_7, window_bounds = array<i64: 1, 128>}, {transform_indices = @transform_8, window_bounds = array<i64: 8, 128>}]} {
    %c0_i32 = arith.constant 0 : i32
    %0 = arith.cmpi eq, %arg1, %c0_i32 : i32
    %1 = arith.extui %0 : i1 to i32
    %c0_i32_0 = arith.constant 0 : i32
    %2 = arith.cmpi ne, %1, %c0_i32_0 : i32
    scf.if %2 {
      %cst_20 = arith.constant 0xFF800000 : f32
      %18 = vector.broadcast %cst_20 : f32 to vector<8x128xf32>
      %c0_21 = arith.constant 0 : index
      %c0_22 = arith.constant 0 : index
      %19 = vector.load %arg11[%c0_21, %c0_22] : memref<8x128xf32, #tpu.memory_space<vmem>>, vector<8x128xf32>
      tpu.vector_store %arg11[%c0_21, %c0_22], %18 {strides = array<i32>} : memref<8x128xf32, #tpu.memory_space<vmem>>, vector<8x128xf32>,
    } else {
    }
    %c0 = arith.constant 0 : index
    %c0_1 = arith.constant 0 : index
    %c0_2 = arith.constant 0 : index
    %3 = vector.load %arg2[%c0, %c0_1, %c0_2] : memref<8x8x32xf32, #tpu.memory_space<vmem>>, vector<8x8x32xf32>
    %cst = arith.constant dense<0xFF800000> : vector<8x32xf32>
    %4 = vector.multi_reduction <maximumf>, %3, %cst [1] : vector<8x8x32xf32> to vector<8x32xf32>
    %c0_3 = arith.constant 0 : index
    %c0_4 = arith.constant 0 : index
    %c0_5 = arith.constant 0 : index
    %5 = vector.load %arg3[%c0_3, %c0_4, %c0_5] : memref<8x8x32xf32, #tpu.memory_space<vmem>>, vector<8x8x32xf32>
    %cst_6 = arith.constant dense<0xFF800000> : vector<8x32xf32>
    %6 = vector.multi_reduction <maximumf>, %5, %cst_6 [1] : vector<8x8x32xf32> to vector<8x32xf32>
    %c0_7 = arith.constant 0 : index
    %c0_8 = arith.constant 0 : index
    %c0_9 = arith.constant 0 : index
    %7 = vector.load %arg4[%c0_7, %c0_8, %c0_9] : memref<8x8x32xf32, #tpu.memory_space<vmem>>, vector<8x8x32xf32>
    %cst_10 = arith.constant dense<0xFF800000> : vector<8x32xf32>
    %8 = vector.multi_reduction <maximumf>, %7, %cst_10 [1] : vector<8x8x32xf32> to vector<8x32xf32>
    %c0_11 = arith.constant 0 : index
    %c0_12 = arith.constant 0 : index
    %c0_13 = arith.constant 0 : index
    %9 = vector.load %arg5[%c0_11, %c0_12, %c0_13] : memref<8x8x32xf32, #tpu.memory_space<vmem>>, vector<8x8x32xf32>
    %cst_14 = arith.constant dense<0xFF800000> : vector<8x32xf32>
    %10 = vector.multi_reduction <maximumf>, %9, %cst_14 [1] : vector<8x8x32xf32> to vector<8x32xf32>
    %11 = tpu.concatenate %4, %6, %8, %10 in 1 : vector<8x32xf32>, vector<8x32xf32>, vector<8x32xf32>, vector<8x32xf32> -> vector<8x128xf32>
    %c0_15 = arith.constant 0 : index
    %c0_16 = arith.constant 0 : index
    %12 = vector.load %arg11[%c0_15, %c0_16] : memref<8x128xf32, #tpu.memory_space<vmem>>, vector<8x128xf32>
    %13 = arith.maximumf %12, %11 : vector<8x128xf32>
    %c0_17 = arith.constant 0 : index
    %c0_18 = arith.constant 0 : index
    %14 = vector.load %arg11[%c0_17, %c0_18] : memref<8x128xf32, #tpu.memory_space<vmem>>, vector<8x128xf32>
    tpu.vector_store %arg11[%c0_17, %c0_18], %13 {strides = array<i32>} : memref<8x128xf32, #tpu.memory_space<vmem>>, vector<8x128xf32>,
    %c2_i32 = arith.constant 2 : i32
    %15 = arith.cmpi eq, %arg1, %c2_i32 : i32
    %16 = arith.extui %15 : i1 to i32
    %c0_i32_19 = arith.constant 0 : i32
    %17 = arith.cmpi ne, %16, %c0_i32_19 : i32
    scf.if %17 {
      %c0_20 = arith.constant 0 : index
      %c0_21 = arith.constant 0 : index
      %18 = vector.load %arg11[%c0_20, %c0_21] : memref<8x128xf32, #tpu.memory_space<vmem>>, vector<8x128xf32>
      %c0_22 = arith.constant 0 : index
      %c0_23 = arith.constant 0 : index
      %19 = vector.load %arg6[%c0_22, %c0_23] : memref<128x256xf32, #tpu.memory_space<vmem>>, vector<128x256xf32>
      %cst_24 = arith.constant dense<0.000000e+00> : vector<8x256xf32>
      %20 = tpu.matmul %18, %19, %cst_24 {dimension_numbers = #tpu.dot_dimension_numbers<[1], [0], [0], [1], [0, 0, 1, 1], [], []>} : vector<8x128xf32>, vector<128x256xf32>, vector<8x256xf32> -> vector<8x256xf32>
      %c0_25 = arith.constant 0 : index
      %c0_26 = arith.constant 0 : index
      %21 = vector.load %arg7[%c0_25, %c0_26] : memref<1x256xf32, #tpu.memory_space<vmem>>, vector<1x256xf32>
      %22 = vector.broadcast %21 : vector<1x256xf32> to vector<8x256xf32>
      %23 = arith.addf %20, %22 : vector<8x256xf32>
      %cst_27 = arith.constant 0.000000e+00 : f32
      %24 = vector.broadcast %cst_27 : f32 to vector<8x256xf32>
      %25 = arith.cmpf oge, %23, %24 : vector<8x256xf32>
      %cst_28 = arith.constant 0.00999999977 : f32
      %26 = vector.broadcast %cst_28 : f32 to vector<8x256xf32>
      %27 = arith.mulf %26, %23 : vector<8x256xf32>
      %28 = arith.select %25, %23, %27 : vector<8x256xi1>, vector<8x256xf32>
      %c0_29 = arith.constant 0 : index
      %c0_30 = arith.constant 0 : index
      %29 = vector.load %arg8[%c0_29, %c0_30] : memref<256x128xf32, #tpu.memory_space<vmem>>, vector<256x128xf32>
      %cst_31 = arith.constant dense<0.000000e+00> : vector<8x128xf32>
      %30 = tpu.matmul %28, %29, %cst_31 {dimension_numbers = #tpu.dot_dimension_numbers<[1], [0], [0], [1], [0, 0, 1, 1], [], []>} : vector<8x256xf32>, vector<256x128xf32>, vector<8x128xf32> -> vector<8x128xf32>
      %c0_32 = arith.constant 0 : index
      %c0_33 = arith.constant 0 : index
      %31 = vector.load %arg9[%c0_32, %c0_33] : memref<1x128xf32, #tpu.memory_space<vmem>>, vector<1x128xf32>
      %32 = vector.broadcast %31 : vector<1x128xf32> to vector<8x128xf32>
      %33 = arith.addf %30, %32 : vector<8x128xf32>
      %c0_34 = arith.constant 0 : index
      %c0_35 = arith.constant 0 : index
      %34 = vector.load %arg10[%c0_34, %c0_35] : memref<8x128xf32, #tpu.memory_space<vmem>>, vector<8x128xf32>
      tpu.vector_store %arg10[%c0_34, %c0_35], %33 {strides = array<i32>} : memref<8x128xf32, #tpu.memory_space<vmem>>, vector<8x128xf32>,
    } else {
    }
    return
  }
  func.func @transform_0(%arg0: i32, %arg1: i32) -> (i32, i32, i32) {
    %c0_i32 = arith.constant 0 : i32
    %c0_i32_0 = arith.constant 0 : i32
    return %arg0, %arg1, %c0_i32 : i32, i32, i32
  }
  func.func @transform_1(%arg0: i32, %arg1: i32) -> (i32, i32, i32) {
    %c0_i32 = arith.constant 0 : i32
    %c0_i32_0 = arith.constant 0 : i32
    return %arg0, %arg1, %c0_i32 : i32, i32, i32
  }
  func.func @transform_2(%arg0: i32, %arg1: i32) -> (i32, i32, i32) {
    %c0_i32 = arith.constant 0 : i32
    %c0_i32_0 = arith.constant 0 : i32
    return %arg0, %arg1, %c0_i32 : i32, i32, i32
  }
  func.func @transform_3(%arg0: i32, %arg1: i32) -> (i32, i32, i32) {
    %c0_i32 = arith.constant 0 : i32
    %c0_i32_0 = arith.constant 0 : i32
    return %arg0, %arg1, %c0_i32 : i32, i32, i32
  }
  func.func @transform_4(%arg0: i32, %arg1: i32) -> (i32, i32) {
    %c0_i32 = arith.constant 0 : i32
    %c0_i32_0 = arith.constant 0 : i32
    %c0_i32_1 = arith.constant 0 : i32
    return %c0_i32, %c0_i32_0 : i32, i32
  }
  func.func @transform_5(%arg0: i32, %arg1: i32) -> (i32, i32) {
    %c0_i32 = arith.constant 0 : i32
    %c0_i32_0 = arith.constant 0 : i32
    %c0_i32_1 = arith.constant 0 : i32
    return %c0_i32, %c0_i32_0 : i32, i32
  }
  func.func @transform_6(%arg0: i32, %arg1: i32) -> (i32, i32) {
    %c0_i32 = arith.constant 0 : i32
    %c0_i32_0 = arith.constant 0 : i32
    %c0_i32_1 = arith.constant 0 : i32
    return %c0_i32, %c0_i32_0 : i32, i32
  }
  func.func @transform_7(%arg0: i32, %arg1: i32) -> (i32, i32) {
    %c0_i32 = arith.constant 0 : i32
    %c0_i32_0 = arith.constant 0 : i32
    %c0_i32_1 = arith.constant 0 : i32
    return %c0_i32, %c0_i32_0 : i32, i32
  }
  func.func @transform_8(%arg0: i32, %arg1: i32) -> (i32, i32) {
    %c0_i32 = arith.constant 0 : i32
    %c0_i32_0 = arith.constant 0 : i32
    return %arg0, %c0_i32 : i32, i32
  }
}

</mosaic_0001>

<bundles_post_ra>
// kernel: tpu_custom_call.1
= control target key start
LH: loop header
LB: loop body
LE: loop exit
PB: predicated region body
PF: predicated region fallthrough
CT: control target
= control target key end

     0   :  { %s2298_s0 = inlined_call_operand.hbm [shape: f32[16,24,32], index: 0, kind: input, shape index: {}]   ;;  %s2299_s1 = inlined_call_operand.hbm [shape: f32[16,24,32], index: 1, kind: input, shape index: {}]   ;;  %s2300_s2 = inlined_call_operand.hbm [shape: f32[16,24,32], index: 2, kind: input, shape index: {}]   ;;  %s2301_s3 = inlined_call_operand.hbm [shape: f32[16,24,32], index: 3, kind: input, shape index: {}]   ;;  %s2302_s4 = inlined_call_operand.hbm [shape: f32[128,256], index: 4, kind: input, shape index: {}]   ;;  %s2303_s5 = inlined_call_operand.vmem [shape: f32[1,256], index: 5, kind: input, shape index: {}]   ;;  %s2304_s6 = inlined_call_operand.hbm [shape: f32[256,128], index: 6, kind: input, shape index: {}]   ;;  %s2305_s7 = inlined_call_operand.vmem [shape: f32[1,128], index: 7, kind: input, shape index: {}]   ;;  %s2306_s8 = inlined_call_operand.hbm [shape: f32[16,128], index: 8, kind: output, shape index: {}]  }
   0x1   :  { %2324 = sst [smem:[#allocation31_spill]] %s2298_s0 }
   0x2   :  { %2325 = sst [smem:[#allocation32_spill]] %s2299_s1 }
   0x3   :  { %2326 = sst [smem:[#allocation33_spill]] %s2302_s4 }
   0x4   :  { %2327 = sst [smem:[#allocation34_spill]] %s2303_s5 }
   0x5   :  { %2328 = sst [smem:[#allocation35_spill]] %s2305_s7 }
   0x6   :  { %2329 = sst [smem:[#allocation36_spill]] %s2306_s8 }
   0x7   :  { %13 = vsyncpa [#allocation4], 0 }
   0x8   :  { %15 = vsyncpa [#allocation4 + $0x1], 0 }
   0x9   :  { %16 = vsyncpa [#allocation7], 0 }
   0xa   :  { %18 = vsyncpa [#allocation7 + $0x1], 0 }
   0xb   :  { %19 = vsyncpa [#allocation10], 0 }
   0xc   :  { %21 = vsyncpa [#allocation10 + $0x1], 0 }
   0xd   :  { %22 = vsyncpa [#allocation13], 0 }
   0xe   :  { %23 = vsyncpa [#allocation5], 0 }
   0xf   :  { %25 = vsyncpa [#allocation5 + $0x1], 0  ;;  %s1861_s27 = smov 0   ;;  %s1863_s28 = smov 0  }
  0x10   :  { %s1865_s29 = smov 0   ;;  %s1867_s30 = smov 0  }
  0x11   :  { %s1869_s9 = smov 0   ;;  %s1871_s10 = smov 0  }
  0x12   :  { %s1873_s11 = smov 0   ;;  %s1875_s12 = smov 0  }
  0x13   :  { %s1877_s13 = smov 0   ;;  %s1879_s14 = smov 0  }
  0x14   :  { %s1881_s15 = smov 0  }
  0x15 LB: > { %2330 = sst [smem:[#allocation21_spill]] %s1757_s27  ;;  %s1915_s16 = sadd.s32 4294967295, %s1797_s15   ;;  %s1797_s15 = sphi %s1881_s15, %s31_s15   ;;  %s1793_s14 = sphi %s1879_s14, %s2379_s14   ;;  %s1789_s13 = sphi %s1877_s13, %s2386_s13   ;;  %s1785_s12 = sphi %s1875_s12, %s2377_s12   ;;  %s1781_s11 = sphi %s1873_s11, %s2385_s11   ;;  %s1777_s10 = sphi %s1871_s10, %s2384_s10   ;;  %s1773_s9 = sphi %s1869_s9, %s2383_s9   ;;  %s1769_s30 = sphi %s1867_s30, %s2382_s30   ;;  %s1765_s29 = sphi %s1865_s29, %s2381_s29   ;;  %s1761_s28 = sphi %s1863_s28, %s2380_s28   ;;  %s1757_s27 = sphi %s1861_s27, %s2376_s27  }
  0x16   : > { %2331 = sst [smem:[#allocation22_spill]] %s1761_s28  ;;  %s1274_s17 = sadd.s32 4294967294, %s1797_s15  }
  0x17   : > { %2332 = sst [smem:[#allocation23_spill]] %s1781_s11  ;;  %p59_p0 = scmp.ne.s32.totalorder %s1777_s10, %s1773_s9 }
  0x18   : > { %2333 = sst [smem:[#allocation24_spill]] %s1785_s12  ;;  %p60_p1 = scmp.eq.s32.totalorder %s1797_s15, 0 }
  0x19   : > { %2334 = sst [smem:[#allocation25_spill]] %s1793_s14  ;;  %p65_p2 = scmp.ne.s32.totalorder %s1773_s9, %s1769_s30 }
  0x1a   : > { %2335 = sst [smem:[#allocation26_spill]] %s1915_s16  ;;  %p2307_p3 = scmp.eq.s32.totalorder %s1915_s16, 0 }
  0x1b   : > { %p1925_p4 = por %p60_p1, %p59_p0  ;;  %p256_p5 = scmp.ne.s32.totalorder %s1765_s29, %s1761_s28 }
  0x1c   : > { %p1933_p6 = por %p2307_p3, %p65_p2  ;;  %p257_p7 = scmp.eq.s32.totalorder %s1915_s16, 5 }
  0x1d   : > { %p262_p8 = scmp.ne.s32.totalorder %s1761_s28, %s1757_s27  ;;  %p263_p9 = scmp.eq.s32.totalorder %s1274_s17, 5 }
  0x1e   : > { %p1940_p10 = por %p257_p7, %p256_p5  ;;  %p1275_p11 = scmp.ge.s32.totalorder %s1797_s15, 1 }
  0x1f   : > { %p1945_p12 = por %p263_p9, %p262_p8  ;;  %p270_p13 = scmp.lt.s32.totalorder %s1797_s15, 7 }
  0x20   : > { %s2338_s22 = scalar_select %p1940_p10, 1, 0 }
  0x21   : > { %s2340_s23 = scalar_select %p1945_p12, 1, 0 }
  0x22   : > { %2339 = sst [smem:[#allocation27_spill]] %s2338_s22  ;;  %p1950_p0 = pnand %p1275_p11, %p270_p13 }
  0x23   : > { %2341 = sst [smem:[#allocation28_spill]] %s2340_s23  ;;  %s1799_s25 = smov [#allocation11]  }
  0x24   : > { %s282_s26 = sshll.u32 %s1799_s25, 4  ;;  %p1367_p1 = pneg %p1950_p0  ;;  %s283_s26 = int_to_ptr.vmem [resolvable:$true] %s282_s26 }
  0x25   : > { %p1393_p2 = scmp.lt.s32.totalorder %s1797_s15, 6  ;;  %s1508_s18 = scalar_lea.vmem %s283_s26, 4096 }
  0x26   : > { %p1959_p5 = pnand %p1367_p1, %p2307_p3  ;;  %p1509_p9 = scmp.ne.s32.totalorder %s283_s26, %s1508_s18 }
  0x27   : > { %p1965_p7 = pnand %p1393_p2, %p1925_p4  ;;  %p1516_p12 = scmp.lt.s32.totalorder %s283_s26, %s283_s26 }
  0x28   : > { %p1499_p8 = pneg %p1959_p5  ;;  %p1517_p1 = scmp.lt.s32.totalorder %s1508_s18, %s1508_s18 }
  0x2a   : > { %p1511_p11 = pnand %p1509_p9, %p1499_p8  ;;  %p1518_p3 = por %p1517_p1, %p1516_p12 }
  0x2c   : > { %p1512_p13 = pneg %p1511_p11 }
  0x2e   : > { %p1519_p10 = pnand %p1518_p3, %p1512_p13 }
  0x30   : > { %1522 = shalt.err (!%p1519_p10)
}
  0x31   : > { %s1800_s20 = smov 256   ;;  %s1801_s25 = smov 16  }
  0x32   : > { %s2345_s4 = sld [smem:[#allocation33_spill]]  ;;  %s40_s18 = sadd.s32 1, %s1789_s13 }
  0x33   : > { %s43_s27 = sadd.s32 1, %s1793_s14  ;;  %p41_p3 = scmp.ge.s32.totalorder %s40_s18, 3 }
  0x34   : > { %s2314_s8 = sand.u32 1, %s1777_s10   ;;  %s1345_s19 = smul.u32 24, %s1793_s14 }
  0x35   : > { %s2388_s18 = smov (%p41_p3, %s40_s18), 0  ;;  %s2390_s27 = smov (!%p41_p3, %s43_s27), %s1793_s14 }
  0x36   : > { %2346 = sst [smem:[#allocation29_spill]] %s2388_s18  ;;  %s48_s22 = ssub.s32 %s1789_s13, %s2388_s18 }
  0x37   : > { %s1989_s12 = sshll.u32 %s2314_s8, 6  ;;  %p45_p4 = scmp.ge.s32.totalorder %s2390_s27, 2 }
  0x38   : > { %1370 = dma.hbm_to_vmem [thread:$0]  (!%p1959_p5), %s2345_s4, 4096, %s283_s26, [#allocation10], %s1800_s20, %s1800_s20, %s1801_s25  }
  0x39   : > { %s2392_s27 = smov (%p45_p4, %s2390_s27), 0  ;;  %s325_s26 = sadd.s32 %s1789_s13, %s1345_s19 }
  0x3a   : > { %2347 = sst [smem:[#allocation30_spill]] %s2392_s27  ;;  %s47_s20 = ssub.s32 %s1793_s14, %s2392_s27 }
  0x3b   : > { %s1998_s25 = sshll.u32 %s325_s26, 7  ;;  %s49_s4 = sor.u32 %s48_s22, %s47_s20 }
  0x3c   : > { %p244_p10 = scmp.eq.s32.totalorder %s47_s20, 0  ;;  %p50_p12 = scmp.eq.s32.totalorder %s49_s4, 0 }
  0x3d   : > { %s2348_s8 = sadd.s32 1, %s1765_s29  ;;  %s2349_s7 = sadd.s32 1, %s1777_s10 }
  0x3e   : > { %s2003_s18 = scalar_select %p244_p10, %s1765_s29, %s2348_s8  }
  0x3f   : > { %s2008_s5 = scalar_select %p50_p12, %s1777_s10, %s2349_s7  }
  0x40   : > { %s2350_s1 = sld [smem:[#allocation32_spill]]  ;;  %s342_s16 = scalar_lea.vmem [#allocation6], %s1989_s12 }
  0x41   : > { %s351_s19 = sshll.u32 %s342_s16, 4  ;;  %s2351_s27 = sand.u32 1, %s1797_s15   ;;  %s352_s19 = int_to_ptr.vmem [resolvable:$true] %s351_s19 }
  0x42   : > { %s2017_s26 = scalar_lea.sflag [#allocation7], %s2351_s27  ;;  %p1525_p2 = pneg %p1965_p7 }
  0x43   : > { %s1536_s22 = scalar_lea.vmem %s352_s19, 1024  ;;  %s1802_s4 = smov [#allocation6]  }
  0x44   : > { %p1537_p9 = scmp.ne.s32.totalorder %s352_s19, %s1536_s22  ;;  %s1541_s7 = sshll.u32 %s1802_s4, 4  ;;  %s1542_s7 = int_to_ptr.vmem [resolvable:$false] %s1541_s7 }
  0x45   : > { %s1543_s8 = scalar_lea.vmem %s1542_s7, 2048  ;;  %p1544_p1 = scmp.lt.s32.totalorder %s352_s19, %s1542_s7 }
  0x46   : > { %s350_s28 = scalar_lea.hbm %s2350_s1, %s1998_s25  ;;  %p1539_p11 = pnand %p1537_p9, %p1525_p2 }
  0x47   : > { %p1545_p3 = scmp.lt.s32.totalorder %s1543_s8, %s1536_s22 }
  0x48   : > { %p1540_p13 = pneg %p1539_p11 }
  0x49   : > { %p1546_p4 = por %p1545_p3, %p1544_p1 }
  0x4b   : > { %p1547_p10 = pnand %p1546_p4, %p1540_p13 }
  0x4d   : > { %1550 = shalt.err (!%p1547_p10)
}
  0x4e   : > { %s2321_s11 = smov 384   ;;  %s1804_s27 = smov 128  }
  0x4f   : > { %s1805_s16 = smov 8   ;;  %s1806_s23 = smov [#allocation12]  }
  0x50   : > { %1380 = dma.hbm_to_vmem [thread:$0]  (!%p1965_p7), %s350_s28, 1024, %s352_s19, %s2017_s26, %s2321_s11, %s1804_s27, %s1805_s16  }
  0x51   : > { %s298_s20 = sshll.u32 %s1806_s23, 4  ;;  %s2352_s0 = sld [smem:[#allocation31_spill]]  ;;  %s299_s20 = int_to_ptr.vmem [resolvable:$true] %s298_s20 }
  0x52   : > { %s1562_s8 = scalar_lea.vmem %s299_s20, 4096  ;;  %p1570_p13 = scmp.lt.s32.totalorder %s299_s20, %s299_s20 }
  0x53   : > { %p1563_p12 = scmp.ne.s32.totalorder %s299_s20, %s1562_s8  ;;  %p1571_p1 = scmp.lt.s32.totalorder %s1562_s8, %s1562_s8 }
  0x55   : > { %p1565_p9 = pnand %p1563_p12, %p1499_p8  ;;  %p1572_p3 = por %p1571_p1, %p1570_p13 }
  0x57   : > { %p1566_p11 = pneg %p1565_p9 }
  0x59   : > { %p1573_p4 = pnand %p1572_p3, %p1566_p11 }
  0x5b   : > { %1576 = shalt.err (!%p1573_p4)
}
  0x5c   : > { %1373 = dma.hbm_to_vmem [thread:$0]  (!%p1959_p5), %s2304_s6, 4096, %s299_s20, [#allocation13], %s1804_s27, %s1804_s27, %s1805_s16  }
  0x5d   : > { %s319_s23 = scalar_lea.vmem [#allocation3], %s1989_s12  ;;  %s2353_s11 = sand.u32 1, %s1777_s10  }
  0x5e   : > { %s328_s4 = sshll.u32 %s319_s23, 4  ;;  %s316_s30 = scalar_lea.sflag [#allocation4], %s2353_s11  ;;  %s329_s4 = int_to_ptr.vmem [resolvable:$true] %s328_s4 }
  0x5f   : > { %s1590_s1 = scalar_lea.vmem %s329_s4, 1024  ;;  %s1807_s28 = smov [#allocation3]  }
  0x60   : > { %p1591_p8 = scmp.ne.s32.totalorder %s329_s4, %s1590_s1  ;;  %s1595_s19 = sshll.u32 %s1807_s28, 4  ;;  %s1596_s19 = int_to_ptr.vmem [resolvable:$false] %s1595_s19 }
  0x61   : > { %s1597_s14 = scalar_lea.vmem %s1596_s19, 2048  ;;  %p1598_p5 = scmp.lt.s32.totalorder %s329_s4, %s1596_s19 }
  0x62   : > { %p1593_p10 = pnand %p1591_p8, %p1525_p2  ;;  %p1599_p9 = scmp.lt.s32.totalorder %s1597_s14, %s1590_s1 }
  0x64   : > { %p1594_p12 = pneg %p1593_p10  ;;  %p1600_p11 = por %p1599_p9, %p1598_p5 }
  0x66   : > { %p1601_p13 = pnand %p1600_p11, %p1594_p12 }
  0x68   : > { %1604 = shalt.err (!%p1601_p13)
}
  0x69   : > { %s2354_s11 = smov 384   ;;  %s2355_s22 = scalar_lea.hbm %s2352_s0, %s1998_s25 }
  0x6a   : > { %1377 = dma.hbm_to_vmem [thread:$0]  (!%p1965_p7), %s2355_s22, 1024, %s329_s4, %s316_s30, %s2354_s11, %s1804_s27, %s1805_s16  }
  0x6b   : > { %s365_s8 = scalar_lea.vmem [#allocation8], %s1989_s12  ;;  %s396_s19 = scalar_lea.hbm %s2301_s3, %s1998_s25 }
  0x6c   : > { %s374_s28 = sshll.u32 %s365_s8, 4  ;;  %s1808_s20 = smov [#allocation8]   ;;  %s375_s28 = int_to_ptr.vmem [resolvable:$true] %s374_s28 }
  0x6d   : > { %s1618_s7 = scalar_lea.vmem %s375_s28, 1024  ;;  %s1623_s23 = sshll.u32 %s1808_s20, 4  ;;  %s1624_s23 = int_to_ptr.vmem [resolvable:$false] %s1623_s23 }
  0x6e   : > { %p1619_p1 = scmp.ne.s32.totalorder %s375_s28, %s1618_s7  ;;  %s1625_s0 = scalar_lea.vmem %s1624_s23, 2048 }
  0x6f   : > { %p1626_p8 = scmp.lt.s32.totalorder %s375_s28, %s1624_s23  ;;  %p1627_p10 = scmp.lt.s32.totalorder %s1625_s0, %s1618_s7 }
  0x70   : > { %p1621_p3 = pnand %p1619_p1, %p1525_p2 }
  0x71   : > { %p1628_p12 = por %p1627_p10, %p1626_p8 }
  0x72   : > { %p1622_p4 = pneg %p1621_p3 }
  0x74   : > { %p1629_p5 = pnand %p1628_p12, %p1622_p4 }
  0x76   : > { %1632 = shalt.err (!%p1629_p5)
}
  0x77   : > { %s2356_s22 = scalar_lea.hbm %s2300_s2, %s1998_s25  ;;  %s388_s8 = scalar_lea.vmem [#allocation9], %s1989_s12 }
  0x78   : > { %1383 = dma.hbm_to_vmem [thread:$0]  (!%p1965_p7), %s2356_s22, 1024, %s375_s28, %s2017_s26, %s2354_s11, %s1804_s27, %s1805_s16  }
  0x79   : > { %s397_s0 = sshll.u32 %s388_s8, 4  ;;  %s2357_s7 = sand.u32 1, %s1797_s15   ;;  %s398_s0 = int_to_ptr.vmem [resolvable:$true] %s397_s0 }
  0x7a   : > { %s385_s1 = scalar_lea.sflag [#allocation10], %s2357_s7  ;;  %s1646_s14 = scalar_lea.vmem %s398_s0, 1024 }
  0x7b   : > { %p1647_p9 = scmp.ne.s32.totalorder %s398_s0, %s1646_s14  ;;  %s1809_s20 = smov [#allocation9]  }
  0x7c   : > { %s1651_s23 = sshll.u32 %s1809_s20, 4  ;;  %s1652_s23 = int_to_ptr.vmem [resolvable:$false] %s1651_s23 }
  0x7d   : > { %p1649_p11 = pnand %p1647_p9, %p1525_p2  ;;  %s1653_s4 = scalar_lea.vmem %s1652_s23, 2048 }
  0x7e   : > { %p1654_p1 = scmp.lt.s32.totalorder %s398_s0, %s1652_s23  ;;  %p1655_p3 = scmp.lt.s32.totalorder %s1653_s4, %s1646_s14 }
  0x7f   : > { %p1650_p13 = pneg %p1649_p11 }
  0x80   : > { %p1656_p4 = por %p1655_p3, %p1654_p1 }
  0x82   : > { %p1657_p8 = pnand %p1656_p4, %p1650_p13 }
  0x84   : > { %1660 = shalt.err (!%p1657_p8)
}
  0x85   : > { %1386 = dma.hbm_to_vmem [thread:$0]  (!%p1965_p7), %s396_s19, 1024, %s398_s0, %s385_s1, %s2354_s11, %s1804_s27, %s1805_s16  }
  0x86   : > { %409 = sbr.rel (%p1950_p0) target bundleno = 810 (0x32a), region = 52  ;;  %s411_s28 = sand.u32 (!%p1950_p0), 1, %s1773_s9  }
  0x87   : > { %s1296_s30 = sshll.u32 (!%p1950_p0), %s411_s28, 6  ;;  %s412_s22 = scalar_lea.sflag (!%p1950_p0), [#allocation4], %s411_s28 }
  0x88   : > { %s2103_s8 = scalar_lea.vmem (!%p1950_p0), [#allocation3], %s1296_s30 }
  0x8b   : > { %1732 = dma.done.wait (%p1933_p6), %s412_s22, 1024  }
  0x8c   : > { %1734 = vsyncadd (%p1933_p6), %s412_s22, 4294966272  ;;  %s2358_s17 = sld [smem:[#allocation26_spill]]  ;;  %s2110_s27 = scalar_lea.vmem [#allocation6], %s1296_s30 }
  0x92   : > { %s420_s7 = sand.u32 1, %s2358_s17  }
  0x93   : > { %s421_s25 = scalar_lea.sflag [#allocation7], %s420_s7 }
  0x94   : > { %1736 = dma.done.wait (%p1933_p6), %s421_s25, 2048  }
  0x95   : > { %1738 = vsyncadd (%p1933_p6), %s421_s25, 4294965248  ;;  %s2116_s24 = scalar_lea.vmem [#allocation8], %s1296_s30  ;;  %s439_s16 = scalar_lea.sflag [#allocation10], %s420_s7 }
  0x96   : > { %s2118_s11 = scalar_lea.vmem [#allocation9], %s1296_s30 }
  0x97   : > { %1740 = dma.done.wait (%p1933_p6), %s439_s16, 1024  }
  0x98   : > { %1742 = vsyncadd (%p1933_p6), %s439_s16, 4294966272  ;;  %p2359_p0 = scmp.eq.s32.totalorder %s2358_s17, 0 }
  0x9a   : > { %1744 = dma.done.wait (%p2359_p0), [#allocation10], 4096   ;;  %p2360_p7 = pmov %p2359_p0 }
  0x9b   : > { %p2361_p2 = pmov %p2359_p0 }
  0x9c   : > { %1746 = vsyncadd (%p2360_p7), [#allocation10], 4294963200 }
  0x9d   : > { %1748 = dma.done.wait (%p2361_p2), [#allocation13], 4096   ;;  %p2362_p10 = pmov %p2359_p0 }
  0x9e   : > { %s2363_s19 = sld [smem:[#allocation22_spill]] }
  0x9f   : > { %1750 = vsyncadd (%p2362_p10), [#allocation13], 4294963200  ;;  %s2364_s14 = sld [smem:[#allocation23_spill]] }
  0xa4   : > { %s495_s0 = sand.u32 1, %s2363_s19  }
  0xa5   : > { %s2135_s1 = sshll.u32 %s495_s0, 3  ;;  %p1303_p6 = scmp.ne.s32.totalorder %s2364_s14, 0 }
  0xa6   : > { %s497_s21 = scalar_lea.vmem [#allocation14], %s2135_s1 }
  0xa7   : > { %505 = sbr.rel (%p1303_p6) target bundleno = 174 (0xae), region = 80 }
  0xac   : > { %v1810_v0 = vmov -inf  }
  0xad   : > { %506 = vst [vmem:[#allocation2] sm:$0xff] %v1810_v0 }
  0xae PF: > { %vm515_vm0 = vcmask 261120   ;;  %v572_v1 = vld [vmem:[%s2110_s27] sm:$0xff]  ;;  %v573_v2 = vld [vmem:[%s2110_s27 + $0x8] sm:$0xff]  ;;  %v574_v3 = vld [vmem:[%s2110_s27 + $0x10] sm:$0xff]  ;;  %vm772_vm1 = vcmask 1041409   ;;  %vm774_vm2 = vcmask 1042434  }
  0xaf   : > { %v575_v4 = vld [vmem:[%s2110_s27 + $0x18] sm:$0xff]  ;;  %v576_v5 = vld [vmem:[%s2110_s27 + $0x20] sm:$0xff]  ;;  %v577_v6 = vld [vmem:[%s2110_s27 + $0x28] sm:$0xff]  ;;  %v580_v7 = vsel %vm515_vm0, %v572_v1, -inf  ;;  %v587_v8 = vsel %vm515_vm0, %v573_v2, -inf  ;;  %v594_v9 = vsel %vm515_vm0, %v574_v3, -inf }
  0xb0   : > { %v578_v10 = vld [vmem:[%s2110_s27 + $0x30] sm:$0xff]  ;;  %v579_v11 = vld [vmem:[%s2110_s27 + $0x38] sm:$0xff]  ;;  %v581_v12 = vrot.slane %v580_v7, 4  ;;  %v588_v13 = vrot.slane %v587_v8, 4  ;;  %v595_v14 = vrot.slane %v594_v9, 4  ;;  %v601_v15 = vsel %vm515_vm0, %v575_v4, -inf }
  0xb1   : > { %v602_v16 = vrot.slane %v601_v15, 4  ;;  %v608_v17 = vsel %vm515_vm0, %v576_v5, -inf  ;;  %v615_v18 = vsel %vm515_vm0, %v577_v6, -inf  ;;  %v622_v19 = vsel %vm515_vm0, %v578_v10, -inf  ;;  %v636_v60 = vld [vmem:[%s2116_s24] sm:$0xff]  ;;  %v637_v61 = vld [vmem:[%s2116_s24 + $0x8] sm:$0xff] }
  0xb2   : > { %v582_v20 = vmax.f32 %v580_v7, %v581_v12  ;;  %v589_v21 = vmax.f32 %v587_v8, %v588_v13  ;;  %v596_v22 = vmax.f32 %v594_v9, %v595_v14  ;;  %v609_v23 = vrot.slane %v608_v17, 4  ;;  %v638_v2 = vld [vmem:[%s2116_s24 + $0x10] sm:$0xff]  ;;  %v639_v3 = vld [vmem:[%s2116_s24 + $0x18] sm:$0xff]  ;;  %v640_v4 = vld [vmem:[%s2116_s24 + $0x20] sm:$0xff]  ;;  %s1811_s20 = smov 32   ;;  %s1812_s23 = smov 64  }
  0xb3   : > { %v603_v24 = vmax.f32 %v601_v15, %v602_v16  ;;  %v616_v25 = vrot.slane %v615_v18, 4  ;;  %v623_v26 = vrot.slane %v622_v19, 4  ;;  %v629_v27 = vsel %vm515_vm0, %v579_v11, -inf  ;;  %v641_v10 = vld [vmem:[%s2116_s24 + $0x28] sm:$0xff]  ;;  %s1813_s4 = smov 96   ;;  %s2365_s12 = sld [smem:[#allocation23_spill]] }
  0xb4   : > { %v583_v28 = vrot.slane %v582_v20, 2  ;;  %v590_v29 = vrot.slane %v589_v21, 2  ;;  %v597_v30 = vrot.slane %v596_v22, 2  ;;  %v610_v31 = vmax.f32 %v608_v17, %v609_v23 }
  0xb5   : > { %v604_v32 = vrot.slane %v603_v24, 2  ;;  %v617_v33 = vmax.f32 %v615_v18, %v616_v25  ;;  %v624_v34 = vmax.f32 %v622_v19, %v623_v26  ;;  %v630_v35 = vrot.slane %v629_v27, 4 }
  0xb6   : > { %v584_v36 = vmax.f32 %v582_v20, %v583_v28  ;;  %v591_v37 = vmax.f32 %v589_v21, %v590_v29  ;;  %v598_v38 = vmax.f32 %v596_v22, %v597_v30  ;;  %v611_v39 = vrot.slane %v610_v31, 2  ;;  %v642_v22 = vld [vmem:[%s2116_s24 + $0x30] sm:$0xff] }
  0xb7   : > { %v605_v40 = vmax.f32 %v603_v24, %v604_v32  ;;  %v618_v41 = vrot.slane %v617_v33, 2  ;;  %v625_v42 = vrot.slane %v624_v34, 2  ;;  %v631_v43 = vmax.f32 %v629_v27, %v630_v35 }
  0xb8   : > { %v585_v44 = vrot.slane %v584_v36, 1  ;;  %v592_v45 = vrot.slane %v591_v37, 1  ;;  %v599_v46 = vrot.slane %v598_v38, 1  ;;  %v612_v47 = vmax.f32 %v610_v31, %v611_v39  ;;  %v643_v31 = vld [vmem:[%s2116_s24 + $0x38] sm:$0xff] }
  0xb9   : > { %v606_v48 = vrot.slane %v605_v40, 1  ;;  %v619_v49 = vmax.f32 %v617_v33, %v618_v41  ;;  %v626_v50 = vmax.f32 %v624_v34, %v625_v42  ;;  %v632_v51 = vrot.slane %v631_v43, 2  ;;  %p1304_p12 = scmp.ne.s32.totalorder %s2365_s12, 2 }
  0xba   : > { %v586_v52 = vmax.f32 %v584_v36, %v585_v44  ;;  %v593_v53 = vmax.f32 %v591_v37, %v592_v45  ;;  %v600_v54 = vmax.f32 %v598_v38, %v599_v46  ;;  %v613_v55 = vrot.slane %v612_v47, 1  ;;  %s2366_s30 = sld [smem:[#allocation34_spill]] (!%p1304_p12) }
  0xbb   : > { %v607_v56 = vmax.f32 %v605_v40, %v606_v48  ;;  %v620_v57 = vrot.slane %v619_v49, 1  ;;  %v627_v58 = vrot.slane %v626_v50, 1  ;;  %v633_v59 = vmax.f32 %v631_v43, %v632_v51  ;;  %v700_v51 = vld [vmem:[%s2118_s11] sm:$0xff]  ;;  %s2367_s17 = sld [smem:[#allocation35_spill]] (!%p1304_p12) }
  0xbc   : > { %v614_v62 = vmax.f32 %v612_v47, %v613_v55  ;;  %vm776_vm3 = vcmask 1043459   ;;  %vm778_vm4 = vcmask 1044484   ;;  %vm780_vm5 = vcmask 1045509  }
  0xbd   : > { %v621_v63 = vmax.f32 %v619_v49, %v620_v57  ;;  %v628_v0 = vmax.f32 %v626_v50, %v627_v58  ;;  %v634_v1 = vrot.slane %v633_v59, 1  ;;  %vm782_vm6 = vcmask 1046534  }
  0xbe   : > { %vm784_vm7 = vcmask 1047559   ;;  %v795_v5 = vsel %vm772_vm1, %v593_v53, %v586_v52  ;;  %v644_v6 = vsel %vm515_vm0, %v636_v60, -inf  ;;  %v651_v7 = vsel %vm515_vm0, %v637_v61, -inf  ;;  %v701_v60 = vld [vmem:[%s2118_s11 + $0x8] sm:$0xff] }
  0xbf   : > { %v635_v8 = vmax.f32 %v633_v59, %v634_v1  ;;  %v796_v9 = vsel %vm774_vm2, %v600_v54, %v795_v5  ;;  %v645_v11 = vrot.slane %v644_v6, 4  ;;  %v652_v12 = vrot.slane %v651_v7, 4  ;;  %v702_v5 = vld [vmem:[%s2118_s11 + $0x10] sm:$0xff] }
  0xc0   : > { %v797_v13 = vsel %vm776_vm3, %v607_v56, %v796_v9  ;;  %v658_v14 = vsel %vm515_vm0, %v638_v2, -inf  ;;  %v665_v15 = vsel %vm515_vm0, %v639_v3, -inf  ;;  %v672_v16 = vsel %vm515_vm0, %v640_v4, -inf }
  0xc1   : > { %v798_v17 = vsel %vm778_vm4, %v614_v62, %v797_v13  ;;  %v646_v18 = vmax.f32 %v644_v6, %v645_v11  ;;  %v653_v19 = vmax.f32 %v651_v7, %v652_v12  ;;  %v659_v20 = vrot.slane %v658_v14, 4  ;;  %v703_v13 = vld [vmem:[%s2118_s11 + $0x18] sm:$0xff] }
  0xc2   : > { %v799_v21 = vsel %vm780_vm5, %v621_v63, %v798_v17  ;;  %v666_v23 = vrot.slane %v665_v15, 4  ;;  %v673_v24 = vrot.slane %v672_v16, 4  ;;  %v679_v25 = vsel %vm515_vm0, %v641_v10, -inf }
  0xc3   : > { %v800_v26 = vsel %vm782_vm6, %v628_v0, %v799_v21  ;;  %v647_v27 = vrot.slane %v646_v18, 2  ;;  %v654_v28 = vrot.slane %v653_v19, 2  ;;  %v660_v29 = vmax.f32 %v658_v14, %v659_v20  ;;  %v704_v14 = vld [vmem:[%s2118_s11 + $0x20] sm:$0xff] }
  0xc4   : > { %v801_v30 = vsel %vm784_vm7, %v635_v8, %v800_v26  ;;  %v667_v32 = vmax.f32 %v665_v15, %v666_v23  ;;  %v674_v33 = vmax.f32 %v672_v16, %v673_v24  ;;  %v680_v34 = vrot.slane %v679_v25, 4 }
  0xc5   : > { %802 = vrot.lane.b32.xlu0 %v801_v30, %s1811_s20  ;;  %v648_v35 = vmax.f32 %v646_v18, %v647_v27  ;;  %v655_v36 = vmax.f32 %v653_v19, %v654_v28  ;;  %v661_v37 = vrot.slane %v660_v29, 2  ;;  %v686_v38 = vsel %vm515_vm0, %v642_v22, -inf  ;;  %v705_v22 = vld [vmem:[%s2118_s11 + $0x28] sm:$0xff]  ;;  %v706_v30 = vld [vmem:[%s2118_s11 + $0x30] sm:$0xff] }
  0xc6   : > { %v668_v39 = vrot.slane %v667_v32, 2  ;;  %v675_v40 = vrot.slane %v674_v33, 2  ;;  %v681_v41 = vmax.f32 %v679_v25, %v680_v34  ;;  %v687_v42 = vrot.slane %v686_v38, 4 }
  0xc7   : > { %v649_v43 = vrot.slane %v648_v35, 1  ;;  %v656_v44 = vrot.slane %v655_v36, 1  ;;  %v662_v45 = vmax.f32 %v660_v29, %v661_v37  ;;  %v693_v46 = vsel %vm515_vm0, %v643_v31, -inf }
  0xc8   : > { %v669_v47 = vmax.f32 %v667_v32, %v668_v39  ;;  %v676_v48 = vmax.f32 %v674_v33, %v675_v40  ;;  %v682_v49 = vrot.slane %v681_v41, 2  ;;  %v688_v50 = vmax.f32 %v686_v38, %v687_v42  ;;  %v707_v38 = vld [vmem:[%s2118_s11 + $0x38] sm:$0xff] }
  0xc9   : > { %v650_v52 = vmax.f32 %v648_v35, %v649_v43  ;;  %v657_v53 = vmax.f32 %v655_v36, %v656_v44  ;;  %v663_v54 = vrot.slane %v662_v45, 1  ;;  %v694_v55 = vrot.slane %v693_v46, 4 }
  0xca   : > { %v670_v56 = vrot.slane %v669_v47, 1  ;;  %v677_v57 = vrot.slane %v676_v48, 1  ;;  %v683_v58 = vmax.f32 %v681_v41, %v682_v49  ;;  %v689_v59 = vrot.slane %v688_v50, 2 }
  0xcb   : > { %v664_v61 = vmax.f32 %v662_v45, %v663_v54  ;;  %v695_v62 = vmax.f32 %v693_v46, %v694_v55  ;;  %v813_v63 = vsel %vm772_vm1, %v657_v53, %v650_v52  ;;  %v708_v0 = vsel %vm515_vm0, %v700_v51, -inf  ;;  %v507_v51 = vld [vmem:[%s2103_s8] sm:$0xff] }
  0xcc   : > { %v671_v1 = vmax.f32 %v669_v47, %v670_v56  ;;  %v678_v2 = vmax.f32 %v676_v48, %v677_v57  ;;  %v684_v3 = vrot.slane %v683_v58, 1  ;;  %v690_v4 = vmax.f32 %v688_v50, %v689_v59 }
  0xcd   : > { %v696_v6 = vrot.slane %v695_v62, 2  ;;  %v814_v7 = vsel %vm774_vm2, %v664_v61, %v813_v63  ;;  %v709_v8 = vrot.slane %v708_v0, 4  ;;  %v715_v9 = vsel %vm515_vm0, %v701_v60, -inf  ;;  %v508_v63 = vld [vmem:[%s2103_s8 + $0x8] sm:$0xff] }
  0xce   : > { %v685_v10 = vmax.f32 %v683_v58, %v684_v3  ;;  %v691_v11 = vrot.slane %v690_v4, 1  ;;  %v815_v12 = vsel %vm776_vm3, %v671_v1, %v814_v7  ;;  %v716_v15 = vrot.slane %v715_v9, 4 }
  0xcf   : > { %v697_v16 = vmax.f32 %v695_v62, %v696_v6  ;;  %v816_v17 = vsel %vm778_vm4, %v678_v2, %v815_v12  ;;  %v710_v18 = vmax.f32 %v708_v0, %v709_v8  ;;  %v722_v19 = vsel %vm515_vm0, %v702_v5, -inf  ;;  %v509_v8 = vld [vmem:[%s2103_s8 + $0x10] sm:$0xff] }
  0xd0   : > { %v692_v20 = vmax.f32 %v690_v4, %v691_v11  ;;  %v817_v21 = vsel %vm780_vm5, %v685_v10, %v816_v17  ;;  %v717_v23 = vmax.f32 %v715_v9, %v716_v15  ;;  %v723_v24 = vrot.slane %v722_v19, 4  ;;  %v510_v17 = vld [vmem:[%s2103_s8 + $0x18] sm:$0xff] }
  0xd1   : > { %v698_v25 = vrot.slane %v697_v16, 1  ;;  %v711_v26 = vrot.slane %v710_v18, 2  ;;  %v729_v27 = vsel %vm515_vm0, %v703_v13, -inf  ;;  %v736_v28 = vsel %vm515_vm0, %v704_v14, -inf }
  0xd2   : > { %v818_v29 = vsel %vm782_vm6, %v692_v20, %v817_v21  ;;  %v718_v31 = vrot.slane %v717_v23, 2  ;;  %v724_v32 = vmax.f32 %v722_v19, %v723_v24  ;;  %v730_v33 = vrot.slane %v729_v27, 4 }
  0xd3   : > { %v699_v34 = vmax.f32 %v697_v16, %v698_v25  ;;  %v712_v35 = vmax.f32 %v710_v18, %v711_v26  ;;  %v737_v36 = vrot.slane %v736_v28, 4  ;;  %v743_v37 = vsel %vm515_vm0, %v705_v22, -inf  ;;  %v511_v26 = vld [vmem:[%s2103_s8 + $0x20] sm:$0xff] }
  0xd4   : > { %v719_v39 = vmax.f32 %v717_v23, %v718_v31  ;;  %v725_v40 = vrot.slane %v724_v32, 2  ;;  %v731_v41 = vmax.f32 %v729_v27, %v730_v33  ;;  %v744_v42 = vrot.slane %v743_v37, 4  ;;  %v512_v27 = vld [vmem:[%s2103_s8 + $0x28] sm:$0xff] }
  0xd5   : > { %v819_v43 = vsel %vm784_vm7, %v699_v34, %v818_v29  ;;  %v713_v44 = vrot.slane %v712_v35, 1  ;;  %v738_v45 = vmax.f32 %v736_v28, %v737_v36  ;;  %v750_v46 = vsel %vm515_vm0, %v706_v30, -inf }
  0xd6   : > { %820 = vrot.lane.b32.xlu0 %v819_v43, %s1812_s23  ;;  %v720_v47 = vrot.slane %v719_v39, 1  ;;  %v726_v48 = vmax.f32 %v724_v32, %v725_v40  ;;  %v732_v49 = vrot.slane %v731_v41, 2  ;;  %v745_v50 = vmax.f32 %v743_v37, %v744_v42  ;;  %v513_v37 = vld [vmem:[%s2103_s8 + $0x30] sm:$0xff] }
  0xd7   : > { %v714_v52 = vmax.f32 %v712_v35, %v713_v44  ;;  %v739_v53 = vrot.slane %v738_v45, 2  ;;  %v751_v54 = vrot.slane %v750_v46, 4  ;;  %v757_v55 = vsel %vm515_vm0, %v707_v38, -inf }
  0xd8   : > { %v721_v56 = vmax.f32 %v719_v39, %v720_v47  ;;  %v727_v57 = vrot.slane %v726_v48, 1  ;;  %v733_v58 = vmax.f32 %v731_v41, %v732_v49  ;;  %v746_v59 = vrot.slane %v745_v50, 2 }
  0xd9   : > { %v740_v60 = vmax.f32 %v738_v45, %v739_v53  ;;  %v752_v61 = vmax.f32 %v750_v46, %v751_v54  ;;  %v758_v62 = vrot.slane %v757_v55, 4  ;;  %v516_v0 = vsel %vm515_vm0, %v507_v51, -inf  ;;  %v514_v46 = vld [vmem:[%s2103_s8 + $0x38] sm:$0xff] }
  0xda   : > { %v728_v1 = vmax.f32 %v726_v48, %v727_v57  ;;  %v734_v2 = vrot.slane %v733_v58, 1  ;;  %v747_v3 = vmax.f32 %v745_v50, %v746_v59  ;;  %v831_v4 = vsel %vm772_vm1, %v721_v56, %v714_v52 }
  0xdb   : > { %v741_v5 = vrot.slane %v740_v60, 1  ;;  %v753_v6 = vrot.slane %v752_v61, 2  ;;  %v759_v7 = vmax.f32 %v757_v55, %v758_v62  ;;  %v517_v9 = vrot.slane %v516_v0, 4 }
  0xdc   : > { %v735_v10 = vmax.f32 %v733_v58, %v734_v2  ;;  %v748_v11 = vrot.slane %v747_v3, 1  ;;  %v832_v12 = vsel %vm774_vm2, %v728_v1, %v831_v4  ;;  %v523_v13 = vsel %vm515_vm0, %v508_v63, -inf }
  0xdd   : > { %v742_v14 = vmax.f32 %v740_v60, %v741_v5  ;;  %v754_v15 = vmax.f32 %v752_v61, %v753_v6  ;;  %v760_v16 = vrot.slane %v759_v7, 2  ;;  %v518_v18 = vmax.f32 %v516_v0, %v517_v9 }
  0xde   : > { %v749_v19 = vmax.f32 %v747_v3, %v748_v11  ;;  %v833_v20 = vsel %vm776_vm3, %v735_v10, %v832_v12  ;;  %v524_v21 = vrot.slane %v523_v13, 4  ;;  %v530_v22 = vsel %vm515_vm0, %v509_v8, -inf }
  0xdf   : > { %v755_v23 = vrot.slane %v754_v15, 1  ;;  %v761_v24 = vmax.f32 %v759_v7, %v760_v16  ;;  %v834_v25 = vsel %vm778_vm4, %v742_v14, %v833_v20  ;;  %v519_v28 = vrot.slane %v518_v18, 2 }
  0xe0   : > { %v835_v29 = vsel %vm780_vm5, %v749_v19, %v834_v25  ;;  %v525_v30 = vmax.f32 %v523_v13, %v524_v21  ;;  %v531_v31 = vrot.slane %v530_v22, 4  ;;  %v537_v32 = vsel %vm515_vm0, %v510_v17, -inf }
  0xe1   : > { %v756_v33 = vmax.f32 %v754_v15, %v755_v23  ;;  %v762_v34 = vrot.slane %v761_v24, 1  ;;  %v520_v35 = vmax.f32 %v518_v18, %v519_v28  ;;  %v538_v36 = vrot.slane %v537_v32, 4 }
  0xe2   : > { %v526_v38 = vrot.slane %v525_v30, 2  ;;  %v532_v39 = vmax.f32 %v530_v22, %v531_v31  ;;  %v544_v40 = vsel %vm515_vm0, %v511_v26, -inf  ;;  %v551_v41 = vsel %vm515_vm0, %v512_v27, -inf }
  0xe3   : > { %v763_v42 = vmax.f32 %v761_v24, %v762_v34  ;;  %v836_v43 = vsel %vm782_vm6, %v756_v33, %v835_v29  ;;  %v521_v44 = vrot.slane %v520_v35, 1  ;;  %v539_v45 = vmax.f32 %v537_v32, %v538_v36  ;;  %v846_v33 = vld [vmem:[#allocation2] sm:$0xff] }
  0xe4   : > { %v527_v47 = vmax.f32 %v525_v30, %v526_v38  ;;  %v533_v48 = vrot.slane %v532_v39, 2  ;;  %v545_v49 = vrot.slane %v544_v40, 4  ;;  %v552_v50 = vrot.slane %v551_v41, 4 }
  0xe5   : > { %v837_v51 = vsel %vm784_vm7, %v763_v42, %v836_v43  ;;  %v522_v52 = vmax.f32 %v520_v35, %v521_v44  ;;  %v540_v53 = vrot.slane %v539_v45, 2  ;;  %v558_v54 = vsel %vm515_vm0, %v513_v37, -inf }
  0xe6   : > { %838 = vrot.lane.b32.xlu1 %v837_v51, %s1813_s4  ;;  %v528_v55 = vrot.slane %v527_v47, 1  ;;  %v534_v56 = vmax.f32 %v532_v39, %v533_v48  ;;  %v546_v57 = vmax.f32 %v544_v40, %v545_v49  ;;  %v553_v58 = vmax.f32 %v551_v41, %v552_v50 }
  0xe7   : > { %v541_v59 = vmax.f32 %v539_v45, %v540_v53  ;;  %v559_v60 = vrot.slane %v558_v54, 4  ;;  %v565_v61 = vsel %vm515_vm0, %v514_v46, -inf  ;;  %vm842_vm8 = vcmask 523264  }
  0xe8   : > { %v529_v62 = vmax.f32 %v527_v47, %v528_v55  ;;  %v535_v63 = vrot.slane %v534_v56, 1  ;;  %v547_v0 = vrot.slane %v546_v57, 2  ;;  %v554_v1 = vrot.slane %v553_v58, 2 }
  0xe9   : > { %v542_v2 = vrot.slane %v541_v59, 1  ;;  %v560_v3 = vmax.f32 %v558_v54, %v559_v60  ;;  %v566_v4 = vrot.slane %v565_v61, 4  ;;  %vm844_vm9 = vcmask 785408  }
  0xea   : > { %v536_v5 = vmax.f32 %v534_v56, %v535_v63  ;;  %v548_v6 = vmax.f32 %v546_v57, %v547_v0  ;;  %v555_v7 = vmax.f32 %v553_v58, %v554_v1  ;;  %v773_v8 = vsel %vm772_vm1, %v529_v62, %v522_v52 }
  0xeb   : > { %v543_v9 = vmax.f32 %v541_v59, %v542_v2  ;;  %v561_v10 = vrot.slane %v560_v3, 2  ;;  %v567_v11 = vmax.f32 %v565_v61, %v566_v4 }
  0xec   : > { %v549_v12 = vrot.slane %v548_v6, 1  ;;  %v556_v13 = vrot.slane %v555_v7, 1  ;;  %v775_v14 = vsel %vm774_vm2, %v536_v5, %v773_v8 }
  0xed   : > { %v562_v15 = vmax.f32 %v560_v3, %v561_v10  ;;  %v568_v16 = vrot.slane %v567_v11, 2  ;;  %v777_v17 = vsel %vm776_vm3, %v543_v9, %v775_v14 }
  0xee   : > { %v550_v18 = vmax.f32 %v548_v6, %v549_v12  ;;  %v557_v19 = vmax.f32 %v555_v7, %v556_v13 }
  0xef   : > { %v563_v20 = vrot.slane %v562_v15, 1  ;;  %v569_v21 = vmax.f32 %v567_v11, %v568_v16 }
  0xf0   : > { %v779_v22 = vsel %vm778_vm4, %v550_v18, %v777_v17 }
  0xf1   : > { %v564_v23 = vmax.f32 %v562_v15, %v563_v20  ;;  %v570_v24 = vrot.slane %v569_v21, 1  ;;  %v781_v25 = vsel %vm780_vm5, %v557_v19, %v779_v22 }
  0xf3   : > { %v571_v26 = vmax.f32 %v569_v21, %v570_v24  ;;  %v783_v27 = vsel %vm782_vm6, %v564_v23, %v781_v25 }
  0xf5   : > { %v785_v28 = vsel %vm784_vm7, %v571_v26, %v783_v27 }
 0x137   : > { %v803_v29 = vpop.permute.xlu0 %802 }
 0x138   : > { %v841_v31 = vsel %vm515_vm0, %v785_v28, %v803_v29 }
 0x148   : > { %v821_v30 = vpop.permute.xlu0 %820 }
 0x149   : > { %v843_v32 = vsel %vm842_vm8, %v841_v31, %v821_v30 }
 0x158   : > { %v839_v34 = vpop.permute.xlu1 %838  ;;  %852 = sbr.rel (%p1304_p12) target bundleno = 783 (0x30f), region = 84 }
 0x159   : > { %v845_v35 = vsel %vm844_vm9, %v843_v32, %v839_v34 }
 0x15a   : > { %v847_v36 = vmax.f32 %v846_v33, %v845_v35 }
 0x15c   : > { %848 = vst [vmem:[#allocation2] sm:$0xff] %v847_v36 }
 0x15d   : > { %v885_v37 = vld [vmem:[#allocation11 + $0xf8] sm:$0xff]  ;;  %v884_v38 = vld [vmem:[#allocation11 + $0xf0] sm:$0xff]  ;;  %v883_v39 = vld [vmem:[#allocation11 + $0xe8] sm:$0xff]  ;;  %v1814_v41 = vmov 0.0  }
 0x15e   : > { %898 = vmatprep.subr.mxu0 %v885_v37  ;;  %v882_v40 = vld [vmem:[#allocation11 + $0xe0] sm:$0xff]  ;;  %962 = vmatprep.mubr.f32.mxu0 %v1814_v41  ;;  %v881_v42 = vld [vmem:[#allocation11 + $0xd8] sm:$0xff]  ;;  %v880_v43 = vld [vmem:[#allocation11 + $0xd0] sm:$0xff] }
 0x15f   : > { %899 = vmatpush1.msra.mxu0 %v884_v38  ;;  %v879_v44 = vld [vmem:[#allocation11 + $0xc8] sm:$0xff]  ;;  %v878_v45 = vld [vmem:[#allocation11 + $0xc0] sm:$0xff]  ;;  %v877_v46 = vld [vmem:[#allocation11 + $0xb8] sm:$0xff] }
 0x160   : > { %900 = vmatprep.subr.mxu0 %v883_v39  ;;  %v876_v47 = vld [vmem:[#allocation11 + $0xb0] sm:$0xff]  ;;  %v875_v48 = vld [vmem:[#allocation11 + $0xa8] sm:$0xff]  ;;  %v874_v49 = vld [vmem:[#allocation11 + $0xa0] sm:$0xff]  ;;  %v888_v39 = vlaneseq }
 0x161   : > { %901 = vmatpush1.msra.mxu0 %v882_v40  ;;  %v873_v50 = vld [vmem:[#allocation11 + $0x98] sm:$0xff]  ;;  %v872_v51 = vld [vmem:[#allocation11 + $0x90] sm:$0xff]  ;;  %v871_v55 = vld [vmem:[#allocation11 + $0x88] sm:$0xff] }
 0x162   : > { %902 = vmatprep.subr.mxu0 %v881_v42  ;;  %v1006_v52 = vld [vmem:[#allocation12 + $0xf8] sm:$0xff]  ;;  %v1005_v54 = vld [vmem:[#allocation12 + $0xf0] sm:$0xff]  ;;  %v870_v57 = vld [vmem:[#allocation11 + $0x80] sm:$0xff]  ;;  %v889_v40 = vshrl.u32 %v888_v39, 7 }
 0x163   : > { %903 = vmatpush1.msra.mxu0 %v880_v43  ;;  %v990_v53 = vld [vmem:[#allocation12 + $0x78] sm:$0xff]  ;;  %1310 = vmatprep.subr.mxu1 %v1006_v52  ;;  %v989_v56 = vld [vmem:[#allocation12 + $0x70] sm:$0xff]  ;;  %v1004_v58 = vld [vmem:[#allocation12 + $0xe8] sm:$0xff] }
 0x164   : > { %904 = vmatprep.subr.mxu0 %v879_v44  ;;  %1311 = vmatpush3.msra.mxu1 %v990_v53  ;;  %v869_v59 = vld [vmem:[#allocation11 + $0x78] sm:$0xff]  ;;  %v988_v60 = vld [vmem:[#allocation12 + $0x68] sm:$0xff]  ;;  %v868_v61 = vld [vmem:[#allocation11 + $0x70] sm:$0xff]  ;;  %v890_v41 = vsub.s32 0, %v889_v40  ;;  %v894_v43 = vsub.s32 1, %v889_v40 }
 0x165   : > { %905 = vmatpush1.msra.mxu0 %v878_v45  ;;  %1312 = vmatprep.subr.mxu1 %v1005_v54  ;;  %v1003_v62 = vld [vmem:[#allocation12 + $0xe0] sm:$0xff]  ;;  %v867_v63 = vld [vmem:[#allocation11 + $0x68] sm:$0xff]  ;;  %v1002_v2 = vld [vmem:[#allocation12 + $0xd8] sm:$0xff] }
 0x166   : > { %906 = vmatprep.subr.mxu0 %v877_v46  ;;  %1313 = vmatpush3.msra.mxu1 %v989_v56  ;;  %v987_v0 = vld [vmem:[#allocation12 + $0x60] sm:$0xff]  ;;  %v865_v3 = vld [vmem:[#allocation11 + $0x58] sm:$0xff]  ;;  %v864_v5 = vld [vmem:[#allocation11 + $0x50] sm:$0xff] }
 0x167   : > { %907 = vmatpush1.msra.mxu0 %v876_v47  ;;  %1314 = vmatprep.subr.mxu1 %v1004_v58  ;;  %v866_v1 = vld [vmem:[#allocation11 + $0x60] sm:$0xff]  ;;  %v986_v4 = vld [vmem:[#allocation12 + $0x58] sm:$0xff]  ;;  %v1001_v6 = vld [vmem:[#allocation12 + $0xd0] sm:$0xff] }
 0x168   : > { %908 = vmatprep.subr.mxu0 %v875_v48  ;;  %1315 = vmatpush3.msra.mxu1 %v988_v60  ;;  %v863_v7 = vld [vmem:[#allocation11 + $0x48] sm:$0xff]  ;;  %v985_v8 = vld [vmem:[#allocation12 + $0x50] sm:$0xff]  ;;  %v862_v9 = vld [vmem:[#allocation11 + $0x40] sm:$0xff] }
 0x169   : > { %909 = vmatpush1.msra.mxu0 %v874_v49  ;;  %1316 = vmatprep.subr.mxu1 %v1003_v62  ;;  %v1000_v10 = vld [vmem:[#allocation12 + $0xc8] sm:$0xff]  ;;  %v861_v11 = vld [vmem:[#allocation11 + $0x38] sm:$0xff]  ;;  %v860_v13 = vld [vmem:[#allocation11 + $0x30] sm:$0xff] }
 0x16a   : > { %910 = vmatprep.subr.mxu0 %v873_v50  ;;  %1317 = vmatpush3.msra.mxu1 %v987_v0  ;;  %v984_v12 = vld [vmem:[#allocation12 + $0x48] sm:$0xff]  ;;  %v999_v14 = vld [vmem:[#allocation12 + $0xc0] sm:$0xff]  ;;  %v998_v18 = vld [vmem:[#allocation12 + $0xb8] sm:$0xff] }
 0x16b   : > { %911 = vmatpush1.msra.mxu0 %v872_v51  ;;  %1318 = vmatprep.subr.mxu1 %v1002_v2  ;;  %v859_v15 = vld [vmem:[#allocation11 + $0x28] sm:$0xff]  ;;  %v983_v16 = vld [vmem:[#allocation12 + $0x40] sm:$0xff]  ;;  %v857_v19 = vld [vmem:[#allocation11 + $0x18] sm:$0xff] }
 0x16c   : > { %912 = vmatprep.subr.mxu0 %v871_v55  ;;  %1319 = vmatpush3.msra.mxu1 %v986_v4  ;;  %v858_v17 = vld [vmem:[#allocation11 + $0x20] sm:$0xff]  ;;  %v982_v20 = vld [vmem:[#allocation12 + $0x38] sm:$0xff]  ;;  %v856_v21 = vld [vmem:[#allocation11 + $0x10] sm:$0xff] }
 0x16d   : > { %913 = vmatpush1.msra.mxu0 %v870_v57  ;;  %1320 = vmatprep.subr.mxu1 %v1001_v6  ;;  %v997_v22 = vld [vmem:[#allocation12 + $0xb0] sm:$0xff]  ;;  %v855_v23 = vld [vmem:[#allocation11 + $0x8] sm:$0xff]  ;;  %v854_v25 = vld [vmem:[#allocation11] sm:$0xff] }
 0x16e   : > { %914 = vmatprep.subr.mxu0 %v869_v59  ;;  %1321 = vmatpush3.msra.mxu1 %v985_v8  ;;  %v981_v24 = vld [vmem:[#allocation12 + $0x30] sm:$0xff]  ;;  %v996_v26 = vld [vmem:[#allocation12 + $0xa8] sm:$0xff]  ;;  %v853_v27 = vld [vmem:[#allocation2] sm:$0xff] }
 0x16f   : > { %915 = vmatpush1.msra.mxu0 %v868_v61  ;;  %1322 = vmatprep.subr.mxu1 %v1000_v10  ;;  %v980_v28 = vld [vmem:[#allocation12 + $0x28] sm:$0xff]  ;;  %v995_v29 = vld [vmem:[#allocation12 + $0xa0] sm:$0xff]  ;;  %v994_v31 = vld [vmem:[#allocation12 + $0x98] sm:$0xff] }
 0x170   : > { %916 = vmatprep.subr.mxu0 %v867_v63  ;;  %1323 = vmatpush3.msra.mxu1 %v984_v12  ;;  %v979_v30 = vld [vmem:[#allocation12 + $0x20] sm:$0xff]  ;;  %v978_v32 = vld [vmem:[#allocation12 + $0x18] sm:$0xff]  ;;  %v993_v33 = vld [vmem:[#allocation12 + $0x90] sm:$0xff] }
 0x171   : > { %917 = vmatpush1.msra.mxu0 %v866_v1  ;;  %1324 = vmatprep.subr.mxu1 %v999_v14  ;;  %v977_v34 = vld [vmem:[#allocation12 + $0x10] sm:$0xff]  ;;  %v992_v35 = vld [vmem:[#allocation12 + $0x88] sm:$0xff]  ;;  %v991_v37 = vld [vmem:[#allocation12 + $0x80] sm:$0xff] }
 0x172   : > { %918 = vmatprep.subr.mxu0 %v865_v3  ;;  %1325 = vmatpush3.msra.mxu1 %v983_v16  ;;  %v976_v36 = vld [vmem:[#allocation12 + $0x8] sm:$0xff]  ;;  %v975_v38 = vld [vmem:[#allocation12] sm:$0xff]  ;;  %v886_v42 = vld [vmem:[%s2366_s30] sm:$0x3] }
 0x173   : > { %919 = vmatpush1.msra.mxu0 %v864_v5  ;;  %1326 = vmatprep.subr.mxu1 %v998_v18  ;;  %v891_v44 = vrot.slane %v886_v42, %v890_v41  ;;  %v895_v45 = vrot.slane %v886_v42, %v894_v43  ;;  %v1305_v55 = vld [vmem:[%s2367_s17] ss:$0 sm:$0xff] }
 0x174   : > { %920 = vmatprep.subr.mxu0 %v863_v7  ;;  %1327 = vmatpush3.msra.mxu1 %v982_v20 }
 0x175   : > { %921 = vmatpush1.msra.mxu0 %v862_v9  ;;  %1328 = vmatprep.subr.mxu1 %v997_v22 }
 0x176   : > { %922 = vmatprep.subr.mxu0 %v861_v11  ;;  %1329 = vmatpush3.msra.mxu1 %v981_v24 }
 0x177   : > { %923 = vmatpush1.msra.mxu0 %v860_v13  ;;  %1330 = vmatprep.subr.mxu1 %v996_v26 }
 0x178   : > { %924 = vmatprep.subr.mxu0 %v859_v15  ;;  %1331 = vmatpush3.msra.mxu1 %v980_v28 }
 0x179   : > { %925 = vmatpush1.msra.mxu0 %v858_v17  ;;  %1332 = vmatprep.subr.mxu1 %v995_v29 }
 0x17a   : > { %926 = vmatprep.subr.mxu0 %v857_v19  ;;  %1333 = vmatpush3.msra.mxu1 %v979_v30 }
 0x17b   : > { %927 = vmatpush1.msra.mxu0 %v856_v21  ;;  %1334 = vmatprep.subr.mxu1 %v994_v31 }
 0x17c   : > { %928 = vmatprep.subr.mxu0 %v855_v23  ;;  %1335 = vmatpush3.msra.mxu1 %v978_v32 }
 0x17d   : > { %929 = vmatpush1.msra.mxu0 %v854_v25  ;;  %1336 = vmatprep.subr.mxu1 %v993_v33 }
 0x17e   : > { %963 = vmatmul.mubr.f32.vlgmr.msra.gmra.mxu0 %v853_v27  ;;  %1337 = vmatpush3.msra.mxu1 %v977_v34 }
 0x17f   : > { %1338 = vmatprep.subr.mxu1 %v992_v35 }
 0x180   : > { %1339 = vmatpush3.msra.mxu1 %v976_v36 }
 0x181   : > { %1340 = vmatprep.subr.mxu1 %v991_v37 }
 0x182   : > { %1341 = vmatpush3.msra.mxu1 %v975_v38 }
 0x23e   : > { %v964_v46 = vpop.f32.mrf.mxu0 }
 0x23f   : > { %v965_v47 = vadd.f32 %v964_v46, %v891_v44 }
 0x240   : > { %v966_v48 = vpop.f32.mrf.mxu0 }
 0x241   : > { %v967_v49 = vadd.f32 %v966_v48, %v895_v45  ;;  %v971_v50 = vmul.f32 0.01, %v965_v47  ;;  %vm969_vm11 = vcmp.ge.f32.partialorder %v965_v47, 0.0 }
 0x243   : > { %vm970_vm10 = vcmp.ge.f32.partialorder %v967_v49, 0.0  ;;  %v972_v51 = vmul.f32 0.01, %v967_v49  ;;  %v973_v53 = vsel %vm969_vm11, %v965_v47, %v971_v50 }
 0x245   : > { %v974_v52 = vsel %vm970_vm10, %v967_v49, %v972_v51 }
 0x246   : > { %1078 = vmatprep.mubr.f32.mxu1 %v974_v52 }
 0x247   : > { %1079 = vmatmul.mubr.f32.vlgmr.msra.gmra.mxu1 %v973_v53 }
 0x307   : > { %v1342_v54 = vpop.f32.mrf.mxu1 }
 0x309   : > { %v1343_v56 = vpop.f32.mrf.mxu1 }
 0x30a   : > { %v1344_v57 = vadd.f32 %v1343_v56, %v1342_v54 }
 0x30c   : > { %v1081_v58 = vadd.f32 %v1344_v57, %v1305_v55 }
 0x30e   : > { %1084 = vst [vmem:[%s497_s21] sm:$0xff] %v1081_v58 }
 0x30f PF: > { %s2368_s7 = sld [smem:[#allocation24_spill]]  ;;  %s1099_s20 = sshll.u32 %s497_s21, 4  ;;  %s1100_s20 = int_to_ptr.vmem [resolvable:$true] %s1099_s20 }
 0x310   : > { %s2370_s27 = sld [smem:[#allocation27_spill]]  ;;  %s1086_s23 = scalar_lea.sflag [#allocation5], %s495_s0 }
 0x311   : > { %s2371_s19 = sld [smem:[#allocation36_spill]]  ;;  %s1661_s4 = scalar_lea.vmem %s1100_s20, 128 }
 0x312   : > { %p1662_p5 = scmp.ne.s32.totalorder %s1100_s20, %s1661_s4  ;;  %s1815_s12 = smov [#allocation14]  }
 0x313   : > { %s1665_s26 = sshll.u32 %s1815_s12, 4  ;;  %s1666_s26 = int_to_ptr.vmem [resolvable:$false] %s1665_s26 }
 0x314   : > { %s1667_s28 = scalar_lea.vmem %s1666_s26, 256  ;;  %p1668_p1 = scmp.lt.s32.totalorder %s1100_s20, %s1666_s26 }
 0x315   : > { %s1307_s24 = sshll.u32 %s2368_s7, 7  ;;  %p1669_p3 = scmp.lt.s32.totalorder %s1667_s28, %s1661_s4 }
 0x316   : > { %p2372_p9 = scmp.ne.s32.totalorder %s2370_s27, 0 }
 0x317   : > { %s1097_s14 = scalar_lea.hbm %s2371_s19, %s1307_s24  ;;  %p1670_p4 = por %p1669_p3, %p1668_p1 }
 0x318   : > { %p1663_p11 = pnand %p1662_p5, %p2372_p9 }
 0x31a   : > { %p1664_p13 = pneg %p1663_p11 }
 0x31c   : > { %p1671_p8 = pnand %p1670_p4, %p1664_p13 }
 0x31e   : > { %1674 = shalt.err (!%p1671_p8)
}
 0x31f   : > { %s1675_s30 = scalar_lea.hbm %s1097_s14, 128  ;;  %s1679_s21 = scalar_lea.hbm %s2371_s19, 256 }
 0x320   : > { %p1676_p0 = scmp.ne.s32.totalorder %s1097_s14, %s1675_s30  ;;  %p1680_p10 = scmp.lt.s32.totalorder %s1097_s14, %s2371_s19 }
 0x321   : > { %p1681_p6 = scmp.lt.s32.totalorder %s1679_s21, %s1675_s30 }
 0x322   : > { %p1677_p7 = pnand %p1676_p0, %p2372_p9 }
 0x323   : > { %p1682_p12 = por %p1681_p6, %p1680_p10 }
 0x324   : > { %p1678_p2 = pneg %p1677_p7 }
 0x326   : > { %p1683_p5 = pnand %p1682_p12, %p1678_p2 }
 0x328   : > { %1686 = shalt.err (!%p1683_p5)
}
 0x329   : > { %1365 = dma.vmem_to_hbm [thread:$0]  (%p2372_p9), %s1100_s20, 128, %s1097_s14, %s1086_s23  }
 0x32a PF: > { %s2373_s17 = sld [smem:[#allocation21_spill]]  ;;  %p1396_p11 = scmp.ge.s32.totalorder %s1797_s15, 2 }
 0x32b   : > { %s2374_s7 = sld [smem:[#allocation28_spill]] }
 0x330   : > { %s1111_s25 = sand.u32 1, %s2373_s17  }
 0x331   : > { %p2375_p13 = scmp.ne.s32.totalorder %s2374_s7, 0  ;;  %s1112_s24 = scalar_lea.sflag [#allocation5], %s1111_s25 }
 0x333   : > { %p1388_p1 = pnand %p1396_p11, %p2375_p13 }
 0x335   : > { %p1389_p3 = pneg %p1388_p1 }
 0x337   : > { %1752 = dma.done.wait (%p1389_p3), %s1112_s24, 128  }
 0x338   : > { %1754 = vsyncadd (%p1389_p3), %s1112_s24, 4294967168  ;;  %s31_s15 = sadd.s32 1, %s1797_s15   ;;  %s2376_s27 = sld [smem:[#allocation22_spill]] }
 0x339   : > { %p28_p4 = scmp.ge.s32.totalorder %s31_s15, 8   ;;  %s2377_s12 = sld [smem:[#allocation25_spill]] }
 0x33a   : > { %s2378_s16 = sld [smem:[#allocation29_spill]]  ;;  %s2380_s28 = smov %s1765_s29 }
 0x33b   : > { %s2379_s14 = sld [smem:[#allocation30_spill]]  ;;  %s2381_s29 = smov %s2003_s18 }
 0x33c   : > { %s2382_s30 = smov %s1773_s9  ;;  %s2383_s9 = smov %s1777_s10 }
 0x33d   : > { %s2384_s10 = smov %s2008_s5  ;;  %s2385_s11 = smov %s1789_s13 }
 0x33e   :  { %30 = sbr.rel (!%p28_p4) target bundleno = 21 (0x15), region = 150 }
 0x340   : > { %s2386_s13 = smov %s2378_s16 }
 0x343   :  { %1117 = vsyncpa [#allocation4], 1 }
 0x344   :  { %1119 = vsyncpa [#allocation4 + $0x1], 1 }
 0x345   :  { %1120 = vsyncpa [#allocation7], 1 }
 0x346   :  { %1122 = vsyncpa [#allocation7 + $0x1], 1 }
 0x347   :  { %1123 = vsyncpa [#allocation10], 1 }
 0x348   :  { %1125 = vsyncpa [#allocation10 + $0x1], 1 }
 0x349   :  { %1126 = vsyncpa [#allocation13], 1 }
 0x34a   :  { %1127 = vsyncpa [#allocation5], 1 }
 0x34b   :  { %1129 = vsyncpa [#allocation5 + $0x1], 1 }

</bundles_post_ra>
